<compile_context>
chip_gen: v6e
topology: v6e:2x2x1
jax: 0.10.0
libtpu: 0.0.40
codegen_flags: <defaults>
</compile_context>

<pallas_src>
import math

import jax
import jax.numpy as jnp
from jax.experimental import pallas as pl
from jax.experimental.pallas import tpu as pltpu


# ----------------------------- Pallas kernels ------------------------------ #

def _mm_kernel(a_ref, b_ref, o_ref):
    o_ref[...] = jnp.dot(
        a_ref[...], b_ref[...], preferred_element_type=jnp.float32
    ).astype(o_ref.dtype)


def _mm_add_kernel(a_ref, b_ref, r_ref, o_ref):
    # o = a @ b + r   (r may be (1, tile) -> broadcast bias, or (M, tile) -> residual)
    acc = jnp.dot(a_ref[...], b_ref[...], preferred_element_type=jnp.float32)
    o_ref[...] = (acc + r_ref[...].astype(jnp.float32)).astype(o_ref.dtype)


def _gate_kernel(top_ref, bot_ref, tb_ref, sb_ref, o_ref):
    # tanh(top + tan_bias) * sigmoid(bottom + sig_bias)
    t = jnp.tanh(top_ref[...] + tb_ref[...])
    z = bot_ref[...] + sb_ref[...]
    s = 1.0 / (1.0 + jnp.exp(-z))
    o_ref[...] = (t * s).astype(o_ref.dtype)


# ------------------------------ call wrappers ------------------------------- #

def _pick_tile_n(n, target=1024):
    """Largest multiple of 128 that divides n, <= target, preferring >=2 grid steps."""
    if n <= 128:
        return n
    cap = min(target, n)
    if n >= 256:
        cap = min(cap, n // 2)  # ensure at least 2 grid steps (v7x megacore)
    best = None
    t = 128
    while t <= cap:
        if n % t == 0:
            best = t
        t += 128
    return best if best is not None else n


def pallas_matmul(a, b, r=None):
    """o = a @ b (+ r).  a:(M,K)  b:(K,N)  r: None | (1,N) bias | (M,N) residual."""
    M, K = a.shape
    K2, N = b.shape
    assert K == K2
    tn = _pick_tile_n(N)
    grid = (N // tn,)

    in_specs = [
        pl.BlockSpec((M, K), lambda j: (0, 0)),
        pl.BlockSpec((K, tn), lambda j: (0, j)),
    ]
    args = [a, b]
    if r is not None:
        rM = r.shape[0]
        in_specs.append(pl.BlockSpec((rM, tn), lambda j: (0, j)))
        args.append(r)
        kernel = _mm_add_kernel
    else:
        kernel = _mm_kernel

    return pl.pallas_call(
        kernel,
        out_shape=jax.ShapeDtypeStruct((M, N), jnp.float32),
        grid_spec=pltpu.PrefetchScalarGridSpec(
            num_scalar_prefetch=0,
            grid=grid,
            in_specs=in_specs,
            out_specs=pl.BlockSpec((M, tn), lambda j: (0, j)),
        ),
        compiler_params=pltpu.CompilerParams(dimension_semantics=("parallel",)),
    )(*args)


def pallas_gate(top, bot, tan_bias, sig_bias):
    """Elementwise gate, all operands (C, N) with N lane-dense."""
    C, N = top.shape
    tn = _pick_tile_n(N)
    grid = (N // tn,)
    spec = pl.BlockSpec((C, tn), lambda j: (0, j))
    return pl.pallas_call(
        _gate_kernel,
        out_shape=jax.ShapeDtypeStruct((C, N), jnp.float32),
        grid_spec=pltpu.PrefetchScalarGridSpec(
            num_scalar_prefetch=0,
            grid=grid,
            in_specs=[spec, spec, spec, spec],
            out_specs=spec,
        ),
        compiler_params=pltpu.CompilerParams(dimension_semantics=("parallel",)),
    )(top, bot, tan_bias, sig_bias)


# --------------------------- layout plumbing helpers ------------------------ #

def _im2col(x, kh, kw, ph, pw):
    """NCHW -> (Cin*kh*kw, N*H*W) patch matrix (pure data movement)."""
    B, C, H, W = x.shape
    xp = jnp.pad(x, ((0, 0), (0, 0), (ph, ph), (pw, pw)))
    taps = []
    for i in range(kh):
        for j in range(kw):
            taps.append(xp[:, :, i:i + H, j:j + W])  # (B, C, H, W)
    p = jnp.stack(taps, axis=0)                      # (kh*kw, B, C, H, W)
    p = p.transpose(2, 0, 1, 3, 4)                   # (C, kh*kw, B, H, W)
    return p.reshape(C * kh * kw, B * H * W)


def _grouped_1x1_to_dense(w, groups):
    """PyTorch grouped 1x1 conv weight (Cout, Cin/g, 1, 1) -> block-diagonal (Cout, Cin)."""
    cout, cpg = w.shape[0], w.shape[1]
    og = cout // groups
    dense = jnp.zeros((cout, cpg * groups), jnp.float32)
    for g in range(groups):
        dense = dense.at[g * og:(g + 1) * og, g * cpg:(g + 1) * cpg].set(
            w[g * og:(g + 1) * og, :, 0, 0])
    return dense


# ------------------------------ module forward ------------------------------ #

def cmasked_conv2d_forward(params, vxin, hxin, h_cond, *, k, padding, colors):
    """Forward pass of CMaskedConv2d (gates=True, hv/res connections=True)."""
    B, C, H, W = vxin.shape
    NHW = B * H * W
    F2 = 2 * C
    to = C * H * W

    # Weight masking (tiny elementwise on weights, done as prep; equals `w.data *= mask`)
    wv = (params["wv"] * params["vmask"]).reshape(F2, -1)   # (2C, C*k*k)
    wh = (params["wh"] * params["hmask"]).reshape(F2, -1)   # (2C, C*k)

    # Masked convolutions as MXU matmuls (lane dim = N*H*W)
    Pv = _im2col(vxin, k, k, padding, padding)               # (C*k*k, NHW)
    Ph = _im2col(hxin, 1, k, 0, padding)                     # (C*k,   NHW)
    vx = pallas_matmul(wv, Pv)                               # (2C, NHW)
    hx = pallas_matmul(wh, Ph)                               # (2C, NHW)

    # hv connection:  hx = hx + tohori(vx)   (1x1 grouped conv fused with residual)
    hx = pallas_matmul(params["w_tohori_dense"], vx, r=hx)   # (2C, NHW)

    # Conditional gate biases: one fused (f | g) matmul+bias per stack
    h2 = h_cond.reshape(B, -1)
    bias_v = pallas_matmul(h2, params["wv_fg_t"], r=params["bv_fg"])  # (B, 2*to)
    bias_h = pallas_matmul(h2, params["wh_fg_t"], r=params["bh_fg"])  # (B, 2*to)

    def bias_to_mat(flat):  # (B, to) -> (C, N*H*W), matching conv column order
        return flat.reshape(B, C, H, W).transpose(1, 0, 2, 3).reshape(C, NHW)

    tb_v, sb_v = bias_to_mat(bias_v[:, :to]), bias_to_mat(bias_v[:, to:])
    tb_h, sb_h = bias_to_mat(bias_h[:, :to]), bias_to_mat(bias_h[:, to:])

    # Gates
    vx_out = pallas_gate(vx[:C], vx[C:], tb_v, sb_v)         # (C, NHW)
    hx_g = pallas_gate(hx[:C], hx[C:], tb_h, sb_h)           # (C, NHW)

    # res connection:  hx_out = hxin + tores(hx_g)   (1x1 grouped conv fused with residual)
    hxin_mat = hxin.transpose(1, 0, 2, 3).reshape(C, NHW)
    hx_out = pallas_matmul(params["w_tores_dense"], hx_g, r=hxin_mat)  # (C, NHW)

    def to_nchw(m):
        return m.reshape(C, B, H, W).transpose(1, 0, 2, 3)

    return to_nchw(vx_out), to_nchw(hx_out)


# ------------------------------- pure-JAX ref ------------------------------- #

def ref_forward(params, vxin, hxin, h_cond, *, k, padding, colors):
    dn = ("NCHW", "OIHW", "NCHW")
    wv = params["wv"] * params["vmask"]
    wh = params["wh"] * params["hmask"]
    vx = jax.lax.conv_general_dilated(
        vxin, wv, (1, 1), [(padding, padding), (padding, padding)], dimension_numbers=dn)
    hx = jax.lax.conv_general_dilated(
        hxin, wh, (1, 1), [(0, 0), (padding, padding)], dimension_numbers=dn)
    hx = hx + jax.lax.conv_general_dilated(
        vx, params["w_tohori"], (1, 1), [(0, 0), (0, 0)],
        dimension_numbers=dn, feature_group_count=colors)

    B, C2, H, W = vx.shape
    C = C2 // 2
    h2 = h_cond.reshape(B, -1)

    def gate(x, wf, bf, wg, bg):
        tb = (h2 @ wf.T + bf).reshape(B, C, H, W)
        sb = (h2 @ wg.T + bg).reshape(B, C, H, W)
        return jnp.tanh(x[:, :C] + tb) * jax.nn.sigmoid(x[:, C:] + sb)

    vx_out = gate(vx, params["wvvf"], params["bvvf"], params["wvvg"], params["bvvg"])
    hx_g = gate(hx, params["wvhf"], params["bvhf"], params["wvhg"], params["bvhg"])
    hx_out = hxin + jax.lax.conv_general_dilated(
        hx_g, params["w_tores"], (1, 1), [(0, 0), (0, 0)],
        dimension_numbers=dn, feature_group_count=colors)
    return vx_out, hx_out


# ----------------------------------- main ----------------------------------- #

if __name__ == "__main__":
    # Small shapes consistent with the module: batch=2, channels=6 (colors=3),
    # spatial 16x16, k=7, padding=3, conditional size 8.
    colors, C, k, padding = 3, 6, 7, 3
    B, H, W = 2, 16, 16
    fr = 8
    to = C * H * W
    F2 = 2 * C
    pc = C // colors

    key = jax.random.PRNGKey(0)
    ks = jax.random.split(key, 16)

    def rnd(kk, shape, scale):
        return jax.random.normal(kk, shape, dtype=jnp.float32) * scale

    wv = rnd(ks[0], (F2, C, k, k), 1.0 / math.sqrt(C * k * k))
    wh = rnd(ks[1], (F2, C, 1, k), 1.0 / math.sqrt(C * k))
    w_tohori = rnd(ks[2], (F2, F2 // colors, 1, 1), 1.0 / math.sqrt(F2 // colors))
    w_tores = rnd(ks[3], (C, C // colors, 1, 1), 1.0 / math.sqrt(C // colors))
    wvvf = rnd(ks[4], (to, fr), 1.0 / math.sqrt(fr)); bvvf = rnd(ks[5], (to,), 0.1)
    wvvg = rnd(ks[6], (to, fr), 1.0 / math.sqrt(fr)); bvvg = rnd(ks[7], (to,), 0.1)
    wvhf = rnd(ks[8], (to, fr), 1.0 / math.sqrt(fr)); bvhf = rnd(ks[9], (to,), 0.1)
    wvhg = rnd(ks[10], (to, fr), 1.0 / math.sqrt(fr)); bvhg = rnd(ks[11], (to,), 0.1)

    vxin = rnd(ks[12], (B, C, H, W), 1.0)
    hxin = rnd(ks[13], (B, C, H, W), 1.0)
    h_cond = rnd(ks[14], (B, fr), 1.0)

    # PixelCNN masks (self_connection=False)
    vmask = jnp.ones((F2, C, k, k), jnp.float32).at[:, :, k // 2:, :].set(0.0)
    hmask = jnp.ones((F2, C, 1, k), jnp.float32).at[:, :, :, k // 2:].set(0.0)
    m = k // 2
    for c in range(colors):
        f, t = c * pc, (c + 1) * pc
        if f > 0:
            hmask = hmask.at[f:t, :f, 0, m].set(1.0)
            hmask = hmask.at[f + C:t + C, :f, 0, m].set(1.0)

    params = dict(
        wv=wv, wh=wh, vmask=vmask, hmask=hmask,
        w_tohori=w_tohori, w_tores=w_tores,
        w_tohori_dense=_grouped_1x1_to_dense(w_tohori, colors),
        w_tores_dense=_grouped_1x1_to_dense(w_tores, colors),
        wvvf=wvvf, bvvf=bvvf, wvvg=wvvg, bvvg=bvvg,
        wvhf=wvhf, bvhf=bvhf, wvhg=wvhg, bvhg=bvhg,
        wv_fg_t=jnp.concatenate([wvvf.T, wvvg.T], axis=1),           # (fr, 2*to)
        bv_fg=jnp.concatenate([bvvf, bvvg])[None, :],                 # (1, 2*to)
        wh_fg_t=jnp.concatenate([wvhf.T, wvhg.T], axis=1),
        bh_fg=jnp.concatenate([bvhf, bvhg])[None, :],
    )

    vx_out, hx_out = cmasked_conv2d_forward(
        params, vxin, hxin, h_cond, k=k, padding=padding, colors=colors)
    jax.block_until_ready((vx_out, hx_out))

    vx_ref, hx_ref = ref_forward(
        params, vxin, hxin, h_cond, k=k, padding=padding, colors=colors)

    assert vx_out.shape == (B, C, H, W) and hx_out.shape == (B, C, H, W)
    assert jnp.allclose(vx_out, vx_ref, atol=1e-3, rtol=1e-3)
    assert jnp.allclose(hx_out, hx_ref, atol=1e-3, rtol=1e-3)
    print("KERNEL_OK")
</pallas_src>

<mosaic_0001>
module attributes {stable_mosaic.version = 11 : i64} {
  func.func @_mm_kernel(%arg0: i32, %arg1: memref<12x294xf32, #tpu.memory_space<vmem>>, %arg2: memref<294x256xf32, #tpu.memory_space<vmem>>, %arg3: memref<12x256xf32, #tpu.memory_space<vmem>>) attributes {dimension_semantics = [#tpu.dimension_semantics<parallel>], iteration_bounds = array<i64: 2>, scalar_prefetch = 0 : i64, scratch_operands = 0 : i64, tpu.core_type = #tpu.core_type<tc>, window_params = [{pipeline_mode = #tpu.pipeline_mode<synchronous>, transform_indices = @transform_0, window_bounds = array<i64: 12, 294>}, {transform_indices = @transform_1, window_bounds = array<i64: 294, 256>}, {transform_indices = @transform_2, window_bounds = array<i64: 12, 256>}]} {
    %c0 = arith.constant 0 : index
    %c0_0 = arith.constant 0 : index
    %0 = vector.load %arg1[%c0, %c0_0] : memref<12x294xf32, #tpu.memory_space<vmem>>, vector<12x294xf32>
    %c0_1 = arith.constant 0 : index
    %c0_2 = arith.constant 0 : index
    %1 = vector.load %arg2[%c0_1, %c0_2] : memref<294x256xf32, #tpu.memory_space<vmem>>, vector<294x256xf32>
    %cst = arith.constant dense<0.000000e+00> : vector<12x256xf32>
    %2 = tpu.matmul %0, %1, %cst {dimension_numbers = #tpu.dot_dimension_numbers<[1], [0], [0], [1], [0, 0, 1, 1], [], []>} : vector<12x294xf32>, vector<294x256xf32>, vector<12x256xf32> -> vector<12x256xf32>
    %c0_3 = arith.constant 0 : index
    %c0_4 = arith.constant 0 : index
    %3 = vector.load %arg3[%c0_3, %c0_4] : memref<12x256xf32, #tpu.memory_space<vmem>>, vector<12x256xf32>
    tpu.vector_store %arg3[%c0_3, %c0_4], %2 {strides = array<i32>} : memref<12x256xf32, #tpu.memory_space<vmem>>, vector<12x256xf32>,
    return
  }
  func.func @transform_0(%arg0: i32) -> (i32, i32) {
    %c0_i32 = arith.constant 0 : i32
    %c0_i32_0 = arith.constant 0 : i32
    %c0_i32_1 = arith.constant 0 : i32
    return %c0_i32, %c0_i32_0 : i32, i32
  }
  func.func @transform_1(%arg0: i32) -> (i32, i32) {
    %c0_i32 = arith.constant 0 : i32
    %c0_i32_0 = arith.constant 0 : i32
    return %c0_i32, %arg0 : i32, i32
  }
  func.func @transform_2(%arg0: i32) -> (i32, i32) {
    %c0_i32 = arith.constant 0 : i32
    %c0_i32_0 = arith.constant 0 : i32
    return %c0_i32, %arg0 : i32, i32
  }
}

</mosaic_0001>

<bundles_post_ra>
// kernel: tpu_custom_call.1
= control target key start
LH: loop header
LB: loop body
LE: loop exit
PB: predicated region body
PF: predicated region fallthrough
CT: control target
= control target key end

     0   :  { %7 = vsyncpa [#allocation3], 0  ;;  %s1033_s0 = inlined_call_operand.hbm [shape: f32[12,294], index: 0, kind: input, shape index: {}]   ;;  %s1034_s1 = inlined_call_operand.hbm [shape: f32[294,512], index: 1, kind: input, shape index: {}]   ;;  %s1035_s2 = inlined_call_operand.hbm [shape: f32[12,512], index: 2, kind: output, shape index: {}]  }
   0x1   :  { %8 = vsyncpa [#allocation6], 0 }
   0x2   :  { %10 = vsyncpa [#allocation6 + $0x1], 0 }
   0x3   :  { %11 = vsyncpa [#allocation4], 0 }
   0x4   :  { %13 = vsyncpa [#allocation4 + $0x1], 0  ;;  %s769_s9 = smov 0   ;;  %s771_s10 = smov 0  }
   0x5   :  { %s773_s11 = smov 0   ;;  %s775_s12 = smov 0  }
   0x6 LB: > { %s790_s13 = sadd.s32 4294967295, %s740_s12   ;;  %s530_s14 = sadd.s32 4294967294, %s740_s12   ;;  %s740_s12 = sphi %s775_s12, %s1057_s12   ;;  %s736_s11 = sphi %s773_s11, %s1056_s11   ;;  %s732_s10 = sphi %s771_s10, %s1055_s10   ;;  %s728_s9 = sphi %s769_s9, %s1054_s9  }
   0x7   : > { %s794_s15 = sadd.s32 1, %s740_s12   ;;  %s47_s16 = sadd.s32 1, %s736_s11 }
   0x8   : > { %s44_s17 = ssub.s32 %s740_s12, %s794_s15  ;;  %p54_p0 = scmp.ne.s32.totalorder %s736_s11, %s732_s10 }
   0x9   : > { %p45_p1 = scmp.eq.s32.totalorder %s44_s17, 0  ;;  %p55_p2 = scmp.eq.s32.totalorder %s740_s12, 0 }
   0xa   : > { %p60_p3 = scmp.ne.s32.totalorder %s732_s10, %s728_s9  ;;  %p1039_p4 = scmp.eq.s32.totalorder %s790_s13, 0 }
   0xb   : > { %s806_s18 = scalar_select %p45_p1, %s736_s11, %s47_s16  }
   0xc   : > { %p808_p5 = por %p55_p2, %p54_p0  ;;  %p814_p6 = por %p1039_p4, %p60_p3 }
   0xd   : > { %p84_p7 = scmp.eq.s32.totalorder %s790_s13, 1  ;;  %p90_p8 = scmp.eq.s32.totalorder %s530_s14, 1 }
   0xe   : > { %s1041_s20 = scalar_select %p814_p6, 1, 0 }
   0xf   : > { %p531_p9 = scmp.ge.s32.totalorder %s740_s12, 1  ;;  %p97_p10 = scmp.lt.s32.totalorder %s740_s12, 3 }
  0x10   : > { %p821_p11 = por %p84_p7, %p54_p0  ;;  %p825_p12 = por %p90_p8, %p60_p3 }
  0x11   : > { %p829_p13 = pnand %p531_p9, %p97_p10  ;;  %s742_s24 = smov [#allocation2]  }
  0x12   : > { %s1042_s21 = scalar_select %p821_p11, 1, 0 }
  0x13   : > { %s1043_s22 = scalar_select %p825_p12, 1, 0 }
  0x14   : > { %s1044_s23 = scalar_select %p829_p13, 1, 0 }
  0x15   : > { %p560_p1 = pneg %p829_p13  ;;  %s109_s25 = sshll.u32 %s742_s24, 4  ;;  %s110_s25 = int_to_ptr.vmem [resolvable:$true] %s109_s25 }
  0x16   : > { %p573_p3 = scmp.lt.s32.totalorder %s740_s12, 2  ;;  %s123_s27 = sand.u32 1, %s736_s11  }
  0x17   : > { %p837_p2 = pnand %p560_p1, %p1039_p4  ;;  %s629_s28 = scalar_lea.vmem %s110_s25, 768 }
  0x18   : > { %p630_p8 = scmp.ne.s32.totalorder %s110_s25, %s629_s28  ;;  %p637_p12 = scmp.lt.s32.totalorder %s110_s25, %s110_s25 }
  0x19   : > { %p620_p7 = pneg %p837_p2  ;;  %p638_p11 = scmp.lt.s32.totalorder %s629_s28, %s629_s28 }
  0x1b   : > { %p632_p9 = pnand %p630_p8, %p620_p7  ;;  %p639_p6 = por %p638_p11, %p637_p12 }
  0x1d   : > { %p633_p10 = pneg %p632_p9 }
  0x1f   : > { %p640_p13 = pnand %p639_p6, %p633_p10 }
  0x21   : > { %643 = shalt.err (!%p640_p13)
}
  0x22   : > { %s743_s29 = smov 384   ;;  %s744_s30 = smov 24  }
  0x23   : > { %563 = dma.hbm_to_vmem [thread:$0]  (!%p837_p2), %s1033_s0, 768, %s110_s25, [#allocation3], %s743_s29, %s743_s29, %s744_s30  }
  0x24   : > { %p855_p1 = pnand %p573_p3, %p808_p5  ;;  %s550_s6 = smul.u32 592, %s123_s27 }
  0x25   : > { %s548_s7 = sshll.u32 %s740_s12, 8  ;;  %s867_s19 = scalar_lea.sflag [#allocation6], %s123_s27 }
  0x26   : > { %s863_s16 = scalar_lea.hbm %s1034_s1, %s548_s7  ;;  %s127_s17 = scalar_lea.vmem [#allocation5], %s550_s6 }
  0x27   : > { %s134_s24 = sshll.u32 %s127_s17, 4  ;;  %s644_s25 = scalar_lea.hbm %s863_s16, 9472  ;;  %s865_s24 = int_to_ptr.vmem [resolvable:$true] %s134_s24 }
  0x28   : > { %p645_p5 = scmp.ne.s32.totalorder %s863_s16, %s644_s25  ;;  %p646_p6 = pneg %p855_p1 }
  0x29   : > { %s649_s29 = scalar_lea.hbm %s1034_s1, 18944  ;;  %p650_p13 = scmp.lt.s32.totalorder %s863_s16, %s1034_s1 }
  0x2a   : > { %p647_p11 = pnand %p646_p6, %p645_p5  ;;  %p651_p2 = scmp.lt.s32.totalorder %s649_s29, %s644_s25 }
  0x2c   : > { %p648_p12 = pneg %p647_p11  ;;  %p652_p3 = por %p651_p2, %p650_p13 }
  0x2e   : > { %p653_p7 = pnand %p652_p3, %p648_p12 }
  0x30   : > { %656 = shalt.err (!%p653_p7)
}
  0x31   : > { %s657_s27 = scalar_lea.vmem %s865_s24, 9472  ;;  %s745_s4 = smov [#allocation5]  }
  0x32   : > { %p658_p8 = scmp.ne.s32.totalorder %s865_s24, %s657_s27  ;;  %s662_s6 = sshll.u32 %s745_s4, 4  ;;  %s663_s6 = int_to_ptr.vmem [resolvable:$false] %s662_s6 }
  0x33   : > { %s664_s7 = scalar_lea.vmem %s663_s6, 18944  ;;  %p665_p5 = scmp.lt.s32.totalorder %s865_s24, %s663_s6 }
  0x34   : > { %p660_p9 = pnand %p658_p8, %p646_p6  ;;  %p666_p11 = scmp.lt.s32.totalorder %s664_s7, %s657_s27 }
  0x36   : > { %p661_p10 = pneg %p660_p9  ;;  %p667_p0 = por %p666_p11, %p665_p5 }
  0x38   : > { %p668_p4 = pnand %p667_p0, %p661_p10 }
  0x3a   : > { %671 = shalt.err (!%p668_p4)
}
  0x3b   : > { %s746_s8 = smov 512   ;;  %s747_s14 = smov 256  }
  0x3c   : > { %s748_s17 = smov 16   ;;  %p1047_p6 = scmp.ne.s32.totalorder %s1044_s23, 0 }
  0x3d   : > { %567 = dma.hbm_to_vmem [thread:$0]  (!%p855_p1), %s863_s16, 9472, %s865_s24, %s867_s19, %s746_s8, %s747_s14, %s748_s17  }
  0x3e   : > { %146 = sbr.rel (%p1047_p6) target bundleno = 354 (0x162), region = 28  ;;  %p1048_p12 = scmp.eq.s32.totalorder (!%p1047_p6), %s790_s13, 0 }
  0x43   : > { %715 = dma.done.wait (%p1048_p12), [#allocation3], 768   ;;  %p1049_p13 = pmov %p1048_p12 }
  0x44   : > { %s895_s25 = sand.u32 1, %s732_s10   ;;  %p1050_p4 = scmp.ne.s32.totalorder %s1041_s20, 0 }
  0x45   : > { %717 = vsyncadd (%p1049_p13), [#allocation3], 4294966528  ;;  %s551_s26 = smul.u32 592, %s895_s25  ;;  %s153_s28 = scalar_lea.sflag [#allocation6], %s895_s25 }
  0x47   : > { %s899_s29 = scalar_lea.vmem [#allocation5], %s551_s26 }
  0x48   : > { %719 = dma.done.wait (%p1050_p4), %s153_s28, 9472  }
  0x49   : > { %721 = vsyncadd (%p1050_p4), %s153_s28, 4294957824  ;;  %v749_v0 = vmov 0.0   ;;  %v216_v1 = vld [vmem:[%s899_s29 + $0xf8] sm:$0xff]  ;;  %v215_v2 = vld [vmem:[%s899_s29 + $0xf0] sm:$0xff]  ;;  %vm266_vm0 = vcmask 1045504   ;;  %vm259_vm1 = vcmask 310272  }
  0x4a   : > { %414 = vmatprep.mubr.f32.mxu1 %v749_v0  ;;  %v214_v3 = vld [vmem:[%s899_s29 + $0xe8] sm:$0xff]  ;;  %273 = vmatprep.subr.mxu0 %v216_v1  ;;  %v213_v4 = vld [vmem:[%s899_s29 + $0xe0] sm:$0xff]  ;;  %v212_v5 = vld [vmem:[%s899_s29 + $0xd8] sm:$0xff]  ;;  %s538_s20 = sshll.u32 %s895_s25, 5  ;;  %s549_s16 = sshll.u32 %s790_s13, 8 }
  0x4b   : > { %274 = vmatpush1.msra.mxu0 %v215_v2  ;;  %v211_v6 = vld [vmem:[%s899_s29 + $0xd0] sm:$0xff]  ;;  %v210_v7 = vld [vmem:[%s899_s29 + $0xc8] sm:$0xff]  ;;  %v209_v8 = vld [vmem:[%s899_s29 + $0xc0] sm:$0xff]  ;;  %s176_s23 = scalar_lea.vmem [#allocation7], %s538_s20  ;;  %s990_s30 = scalar_lea.hbm %s1035_s2, %s549_s16 }
  0x4c   : > { %275 = vmatprep.subr.mxu0 %v214_v3  ;;  %v208_v9 = vld [vmem:[%s899_s29 + $0xb8] sm:$0xff]  ;;  %v207_v10 = vld [vmem:[%s899_s29 + $0xb0] sm:$0xff]  ;;  %v206_v11 = vld [vmem:[%s899_s29 + $0xa8] sm:$0xff]  ;;  %s445_s5 = sshll.u32 %s176_s23, 4  ;;  %s432_s3 = scalar_lea.sflag [#allocation4], %s895_s25  ;;  %s985_s5 = int_to_ptr.vmem [resolvable:$true] %s445_s5 }
  0x4d   : > { %276 = vmatpush1.msra.mxu0 %v213_v4  ;;  %v205_v12 = vld [vmem:[%s899_s29 + $0xa0] sm:$0xff]  ;;  %v204_v13 = vld [vmem:[%s899_s29 + $0x98] sm:$0xff]  ;;  %v203_v14 = vld [vmem:[%s899_s29 + $0x90] sm:$0xff]  ;;  %s672_s13 = scalar_lea.vmem %s985_s5, 512  ;;  %p1051_p1 = scmp.ne.s32.totalorder %s1042_s21, 0 }
  0x4e   : > { %277 = vmatprep.subr.mxu0 %v212_v5  ;;  %v202_v15 = vld [vmem:[%s899_s29 + $0x88] sm:$0xff]  ;;  %v201_v16 = vld [vmem:[%s899_s29 + $0x80] sm:$0xff]  ;;  %v200_v17 = vld [vmem:[%s899_s29 + $0x78] sm:$0xff]  ;;  %p673_p0 = scmp.ne.s32.totalorder %s985_s5, %s672_s13  ;;  %s750_s27 = smov [#allocation7]  }
  0x4f   : > { %278 = vmatpush1.msra.mxu0 %v211_v6  ;;  %v199_v18 = vld [vmem:[%s899_s29 + $0x70] sm:$0xff]  ;;  %v198_v19 = vld [vmem:[%s899_s29 + $0x68] sm:$0xff]  ;;  %v197_v20 = vld [vmem:[%s899_s29 + $0x60] sm:$0xff]  ;;  %s676_s4 = sshll.u32 %s750_s27, 4  ;;  %s677_s4 = int_to_ptr.vmem [resolvable:$false] %s676_s4 }
  0x50   : > { %279 = vmatprep.subr.mxu0 %v210_v7  ;;  %v258_v21 = vld [vmem:[%s899_s29 + $0x248] sm:$0x3f]  ;;  %v196_v22 = vld [vmem:[%s899_s29 + $0x58] sm:$0xff]  ;;  %v257_v23 = vld [vmem:[%s899_s29 + $0x240] sm:$0x3f]  ;;  %p674_p2 = pnand %p673_p0, %p1051_p1  ;;  %s678_s6 = scalar_lea.vmem %s677_s4, 1024 }
  0x51   : > { %280 = vmatpush1.msra.mxu0 %v209_v8  ;;  %539 = vmatprep.subr.msk.mxu1 %vm266_vm0, %v258_v21  ;;  %v195_v24 = vld [vmem:[%s899_s29 + $0x50] sm:$0xff]  ;;  %v256_v25 = vld [vmem:[%s899_s29 + $0x238] sm:$0xff]  ;;  %v194_v27 = vld [vmem:[%s899_s29 + $0x48] sm:$0xff]  ;;  %p679_p7 = scmp.lt.s32.totalorder %s985_s5, %s677_s4  ;;  %p680_p8 = scmp.lt.s32.totalorder %s678_s6, %s672_s13 }
  0x52   : > { %281 = vmatprep.subr.mxu0 %v208_v9  ;;  %540 = vmatpush1.msk.msra.mxu1 %vm266_vm0, %v257_v23  ;;  %v255_v26 = vld [vmem:[%s899_s29 + $0x230] sm:$0xff]  ;;  %v254_v28 = vld [vmem:[%s899_s29 + $0x228] sm:$0xff]  ;;  %v193_v29 = vld [vmem:[%s899_s29 + $0x40] sm:$0xff]  ;;  %p675_p3 = pneg %p674_p2 }
  0x53   : > { %282 = vmatpush1.msra.mxu0 %v207_v10  ;;  %374 = vmatprep.subr.mxu1 %v256_v25  ;;  %v253_v30 = vld [vmem:[%s899_s29 + $0x220] sm:$0xff]  ;;  %v252_v31 = vld [vmem:[%s899_s29 + $0x218] sm:$0xff]  ;;  %v251_v33 = vld [vmem:[%s899_s29 + $0x210] sm:$0xff]  ;;  %p681_p9 = por %p680_p8, %p679_p7 }
  0x54   : > { %283 = vmatprep.subr.mxu0 %v206_v11  ;;  %375 = vmatpush1.msra.mxu1 %v255_v26  ;;  %v192_v32 = vld [vmem:[%s899_s29 + $0x38] sm:$0xff]  ;;  %v191_v34 = vld [vmem:[%s899_s29 + $0x30] sm:$0xff]  ;;  %v250_v35 = vld [vmem:[%s899_s29 + $0x208] sm:$0xff] }
  0x55   : > { %284 = vmatpush1.msra.mxu0 %v205_v12  ;;  %376 = vmatprep.subr.mxu1 %v254_v28  ;;  %v190_v36 = vld [vmem:[%s899_s29 + $0x28] sm:$0xff]  ;;  %v249_v37 = vld [vmem:[%s899_s29 + $0x200] sm:$0xff]  ;;  %v188_v40 = vld [vmem:[%s899_s29 + $0x18] sm:$0xff]  ;;  %p682_p10 = pnand %p681_p9, %p675_p3 }
  0x56   : > { %285 = vmatprep.subr.mxu0 %v204_v13  ;;  %377 = vmatpush1.msra.mxu1 %v253_v30  ;;  %v189_v38 = vld [vmem:[%s899_s29 + $0x20] sm:$0xff]  ;;  %v180_v41 = vld [vmem:[#allocation2 + $0x8] sm:$0xff]  ;;  %v187_v42 = vld [vmem:[%s899_s29 + $0x10] sm:$0xff] }
  0x57   : > { %286 = vmatpush1.msra.mxu0 %v203_v14  ;;  %378 = vmatprep.subr.mxu1 %v252_v31  ;;  %v181_v39 = vld [vmem:[#allocation2 + $0x10] sm:$0xff]  ;;  %v186_v43 = vld [vmem:[%s899_s29 + $0x8] sm:$0xff]  ;;  %v248_v46 = vld [vmem:[%s899_s29 + $0x1f8] sm:$0xff] }
  0x58   : > { %287 = vmatprep.subr.mxu0 %v202_v15  ;;  %379 = vmatpush1.msra.mxu1 %v251_v33  ;;  %v185_v44 = vld [vmem:[%s899_s29] sm:$0xff]  ;;  %v184_v45 = vld [vmem:[#allocation2 + $0x28] sm:$0xf]  ;;  %v247_v47 = vld [vmem:[%s899_s29 + $0x1f0] sm:$0xff] }
  0x59   : > { %288 = vmatpush1.msra.mxu0 %v201_v16  ;;  %380 = vmatprep.subr.mxu1 %v250_v35  ;;  %v246_v48 = vld [vmem:[%s899_s29 + $0x1e8] sm:$0xff]  ;;  %v245_v49 = vld [vmem:[%s899_s29 + $0x1e0] sm:$0xff]  ;;  %v244_v50 = vld [vmem:[%s899_s29 + $0x1d8] sm:$0xff] }
  0x5a   : > { %289 = vmatprep.subr.mxu0 %v200_v17  ;;  %381 = vmatpush1.msra.mxu1 %v249_v37  ;;  %v243_v51 = vld [vmem:[%s899_s29 + $0x1d0] sm:$0xff]  ;;  %v242_v52 = vld [vmem:[%s899_s29 + $0x1c8] sm:$0xff]  ;;  %v241_v53 = vld [vmem:[%s899_s29 + $0x1c0] sm:$0xff] }
  0x5b   : > { %290 = vmatpush1.msra.mxu0 %v199_v18  ;;  %541 = vmatmul.mubr.msk.f32.vlgmr.msra.gmra.mxu1 %vm259_vm1, %v181_v39  ;;  %v240_v54 = vld [vmem:[%s899_s29 + $0x1b8] sm:$0xff]  ;;  %v239_v55 = vld [vmem:[%s899_s29 + $0x1b0] sm:$0xff]  ;;  %v238_v56 = vld [vmem:[%s899_s29 + $0x1a8] sm:$0xff] }
  0x5c   : > { %291 = vmatprep.subr.mxu0 %v198_v19  ;;  %337 = vmatprep.mubr.f32.mxu0 %v180_v41  ;;  %v237_v57 = vld [vmem:[%s899_s29 + $0x1a0] sm:$0xff]  ;;  %v236_v58 = vld [vmem:[%s899_s29 + $0x198] sm:$0xff]  ;;  %v235_v59 = vld [vmem:[%s899_s29 + $0x190] sm:$0xff] }
  0x5d   : > { %292 = vmatpush1.msra.mxu0 %v197_v20  ;;  %420 = vmatprep.mubr.f32.mxu1 %v749_v0  ;;  %v234_v60 = vld [vmem:[%s899_s29 + $0x188] sm:$0xff]  ;;  %v233_v61 = vld [vmem:[%s899_s29 + $0x180] sm:$0xff]  ;;  %v232_v62 = vld [vmem:[%s899_s29 + $0x178] sm:$0xff] }
  0x5e   : > { %293 = vmatprep.subr.mxu0 %v196_v22  ;;  %v231_v63 = vld [vmem:[%s899_s29 + $0x170] sm:$0xff]  ;;  %v230_v0 = vld [vmem:[%s899_s29 + $0x168] sm:$0xff]  ;;  %v229_v1 = vld [vmem:[%s899_s29 + $0x160] sm:$0xff] }
  0x5f   : > { %294 = vmatpush1.msra.mxu0 %v195_v24  ;;  %542 = vmatmul.mubr.msk.f32.gmra.mxu1 %vm259_vm1, %v184_v45  ;;  %v228_v2 = vld [vmem:[%s899_s29 + $0x158] sm:$0xff]  ;;  %v227_v3 = vld [vmem:[%s899_s29 + $0x150] sm:$0xff]  ;;  %v226_v4 = vld [vmem:[%s899_s29 + $0x148] sm:$0xff] }
  0x60   : > { %295 = vmatprep.subr.mxu0 %v194_v27  ;;  %v225_v5 = vld [vmem:[%s899_s29 + $0x140] sm:$0xff]  ;;  %v224_v6 = vld [vmem:[%s899_s29 + $0x138] sm:$0xff]  ;;  %v223_v7 = vld [vmem:[%s899_s29 + $0x130] sm:$0xff] }
  0x61   : > { %296 = vmatpush1.msra.mxu0 %v193_v29  ;;  %v222_v8 = vld [vmem:[%s899_s29 + $0x128] sm:$0xff]  ;;  %v221_v9 = vld [vmem:[%s899_s29 + $0x120] sm:$0xff]  ;;  %v220_v10 = vld [vmem:[%s899_s29 + $0x118] sm:$0xff] }
  0x62   : > { %297 = vmatprep.subr.mxu0 %v192_v32  ;;  %v219_v11 = vld [vmem:[%s899_s29 + $0x110] sm:$0xff]  ;;  %v218_v12 = vld [vmem:[%s899_s29 + $0x108] sm:$0xff]  ;;  %v217_v13 = vld [vmem:[%s899_s29 + $0x100] sm:$0xff] }
  0x63   : > { %298 = vmatpush1.msra.mxu0 %v191_v34  ;;  %v179_v14 = vld [vmem:[#allocation2] sm:$0xff]  ;;  %v182_v16 = vld [vmem:[#allocation2 + $0x18] sm:$0xf] }
  0x64   : > { %299 = vmatprep.subr.mxu0 %v190_v36  ;;  %v183_v15 = vld [vmem:[#allocation2 + $0x20] sm:$0xf] }
  0x65   : > { %300 = vmatpush1.msra.mxu0 %v189_v38 }
  0x66   : > { %301 = vmatprep.subr.mxu0 %v188_v40 }
  0x67   : > { %302 = vmatpush1.msra.mxu0 %v187_v42 }
  0x68   : > { %303 = vmatprep.subr.mxu0 %v186_v43 }
  0x69   : > { %304 = vmatpush1.msra.mxu0 %v185_v44 }
  0x6a   : > { %305 = vmatprep.subr.mxu0 %v248_v46 }
  0x6b   : > { %306 = vmatpush2.msra.mxu0 %v247_v47 }
  0x6c   : > { %307 = vmatprep.subr.mxu0 %v246_v48 }
  0x6d   : > { %308 = vmatpush2.msra.mxu0 %v245_v49 }
  0x6e   : > { %309 = vmatprep.subr.mxu0 %v244_v50 }
  0x6f   : > { %310 = vmatpush2.msra.mxu0 %v243_v51 }
  0x70   : > { %311 = vmatprep.subr.mxu0 %v242_v52 }
  0x71   : > { %312 = vmatpush2.msra.mxu0 %v241_v53 }
  0x72   : > { %313 = vmatprep.subr.mxu0 %v240_v54 }
  0x73   : > { %314 = vmatpush2.msra.mxu0 %v239_v55 }
  0x74   : > { %315 = vmatprep.subr.mxu0 %v238_v56 }
  0x75   : > { %316 = vmatpush2.msra.mxu0 %v237_v57 }
  0x76   : > { %317 = vmatprep.subr.mxu0 %v236_v58 }
  0x77   : > { %318 = vmatpush2.msra.mxu0 %v235_v59 }
  0x78   : > { %319 = vmatprep.subr.mxu0 %v234_v60 }
  0x79   : > { %320 = vmatpush2.msra.mxu0 %v233_v61 }
  0x7a   : > { %321 = vmatprep.subr.mxu0 %v232_v62 }
  0x7b   : > { %322 = vmatpush2.msra.mxu0 %v231_v63 }
  0x7c   : > { %323 = vmatprep.subr.mxu0 %v230_v0 }
  0x7d   : > { %324 = vmatpush2.msra.mxu0 %v229_v1 }
  0x7e   : > { %325 = vmatprep.subr.mxu0 %v228_v2 }
  0x7f   : > { %326 = vmatpush2.msra.mxu0 %v227_v3 }
  0x80   : > { %327 = vmatprep.subr.mxu0 %v226_v4 }
  0x81   : > { %328 = vmatpush2.msra.mxu0 %v225_v5 }
  0x82   : > { %329 = vmatprep.subr.mxu0 %v224_v6 }
  0x83   : > { %330 = vmatpush2.msra.mxu0 %v223_v7 }
  0x84   : > { %331 = vmatprep.subr.mxu0 %v222_v8 }
  0x85   : > { %332 = vmatpush2.msra.mxu0 %v221_v9 }
  0x86   : > { %333 = vmatprep.subr.mxu0 %v220_v10 }
  0x87   : > { %334 = vmatpush2.msra.mxu0 %v219_v11 }
  0x88   : > { %335 = vmatprep.subr.mxu0 %v218_v12 }
  0x89   : > { %336 = vmatpush2.msra.mxu0 %v217_v13 }
  0x8a   : > { %338 = vmatmul.mubr.f32.vlgmr.msra.gmra.mxu0 %v179_v14 }
  0x8b   : > { %343 = vmatprep.mubr.f32.mxu0 %v183_v15 }
  0x8e   : > { %344 = vmatmul.mubr.f32.gmra.mxu0 %v182_v16 }
 0x11b   : > { %v416_v17 = vpop.f32.mrf.mxu1 }
 0x11d   : > { %v418_v18 = vpop.f32.mrf.mxu1 }
 0x11f   : > { %v422_v22 = vpop.f32.mrf.mxu1 }
 0x121   : > { %v424_v26 = vpop.f32.mrf.mxu1 }
 0x14a   : > { %v339_v19 = vpop.f32.mrf.mxu0 }
 0x14b   : > { %v417_v20 = vadd.f32 %v416_v17, %v339_v19 }
 0x14c   : > { %v341_v21 = vpop.f32.mrf.mxu0 }
 0x14d   : > { %427 = vst [vmem:[%s176_s23] sm:$0xff] %v417_v20  ;;  %v419_v23 = vadd.f32 %v418_v18, %v341_v21 }
 0x14e   : > { %v345_v24 = vpop.f32.mrf.mxu0 }
 0x14f   : > { %428 = vst [vmem:[%s176_s23 + $0x8] sm:$0xff] %v419_v23  ;;  %v423_v25 = vadd.f32 %v422_v22, %v345_v24 }
 0x150   : > { %v347_v27 = vpop.f32.mrf.mxu0 }
 0x151   : > { %429 = vst [vmem:[%s176_s23 + $0x10] sm:$0xf] %v423_v25  ;;  %v425_v28 = vadd.f32 %v424_v26, %v347_v27 }
 0x153   : > { %430 = vst [vmem:[%s176_s23 + $0x18] sm:$0xf] %v425_v28 }
 0x154   : > { %685 = shalt.err (!%p682_p10)
}
 0x155   : > { %s686_s7 = scalar_lea.hbm %s990_s30, 512  ;;  %s690_s17 = scalar_lea.hbm %s1035_s2, 1024 }
 0x156   : > { %p687_p5 = scmp.ne.s32.totalorder %s990_s30, %s686_s7  ;;  %p691_p12 = scmp.lt.s32.totalorder %s990_s30, %s1035_s2 }
 0x157   : > { %p692_p13 = scmp.lt.s32.totalorder %s690_s17, %s686_s7 }
 0x158   : > { %p688_p11 = pnand %p687_p5, %p1051_p1 }
 0x159   : > { %p693_p4 = por %p692_p13, %p691_p12 }
 0x15a   : > { %p689_p6 = pneg %p688_p11 }
 0x15c   : > { %p694_p0 = pnand %p693_p4, %p689_p6 }
 0x15e   : > { %697 = shalt.err (!%p694_p0)
}
 0x15f   : > { %s751_s29 = smov 256   ;;  %s752_s20 = smov 512  }
 0x160   : > { %s753_s23 = smov 16  }
 0x161   : > { %558 = dma.vmem_to_hbm [thread:$0]  (%p1051_p1), %s985_s5, 512, %s990_s30, %s432_s3, %s751_s29, %s752_s20, %s753_s23  }
 0x162 PF: > { %s460_s16 = sand.u32 1, %s728_s9   ;;  %p1052_p2 = scmp.ne.s32.totalorder %s1043_s22, 0 }
 0x163   : > { %p1053_p3 = scmp.ge.s32.totalorder %s740_s12, 2  ;;  %s461_s24 = scalar_lea.sflag [#allocation4], %s460_s16 }
 0x165   : > { %p569_p7 = pnand %p1053_p3, %p1052_p2 }
 0x167   : > { %p570_p8 = pneg %p569_p7 }
 0x169   : > { %723 = dma.done.wait (%p570_p8), %s461_s24, 512  }
 0x16a   : > { %725 = vsyncadd (%p570_p8), %s461_s24, 4294966784  ;;  %p16_p9 = scmp.ge.s32.totalorder %s794_s15, 4   ;;  %s1054_s9 = smov %s732_s10 }
 0x16b   : > { %s1055_s10 = smov %s736_s11  ;;  %s1056_s11 = smov %s806_s18 }
 0x16c   : > { %s1057_s12 = smov %s794_s15  ;;  %18 = sbr.rel (!%p16_p9) target bundleno = 6 (0x6), region = 78 }
 0x171   :  { %466 = vsyncpa [#allocation3], 1 }
 0x172   :  { %468 = vsyncpa [#allocation3 + $0x1], 1 }
 0x173   :  { %469 = vsyncpa [#allocation6], 1 }
 0x174   :  { %471 = vsyncpa [#allocation6 + $0x1], 1 }
 0x175   :  { %472 = vsyncpa [#allocation4], 1 }
 0x176   :  { %474 = vsyncpa [#allocation4 + $0x1], 1 }

</bundles_post_ra>
